<compile_context>
chip_gen: v5e
topology: v5e:2x2
jax: 0.10.0
libtpu: 0.0.40
codegen_flags: <defaults>
</compile_context>

<pallas_src>
import jax
import jax.numpy as jnp
from jax import lax
from jax.experimental import pallas as pl
from jax.experimental.pallas import tpu as pltpu


def _tv_kernel(x_ref, o_ref, prev_ref):
    """One (batch, H-tile) grid step.

    x_ref    : (1, C, TH, W)  input tile, native dtype
    o_ref    : (1, TH, W)     channel-summed TV map tile (float32)
    prev_ref : (C, 1, W)      carried last row of the previous H tile
    """
    # First H tile of every batch: the vertical halo row is conv2d's zero
    # padding, so reset the carried row.
    @pl.when(pl.program_id(1) == 0)
    def _():
        prev_ref[...] = jnp.zeros_like(prev_ref)

    _, c, th, w = x_ref.shape

    # Narrow boundary masks, hoisted out of the channel loop.
    row0 = lax.broadcasted_iota(jnp.int32, (th, 1), 0) == 0   # (TH, 1)
    col0 = lax.broadcasted_iota(jnp.int32, (1, w), 1) == 0    # (1, W)

    def channel_tv(ci, acc):
        xc = x_ref[0, ci]                       # (TH, W), native dtype
        prev = prev_ref[ci]                     # (1, W)

        # vdiff[y] = x[y-1] - x[y]; row 0 uses the carried halo row (or 0).
        x_up = jnp.where(row0, prev, pltpu.roll(xc, shift=1, axis=0))
        # hdiff[k] = x[k-1] - x[k]; column 0 uses the conv2d zero padding.
        x_left = jnp.where(col0, 0.0, pltpu.roll(xc, shift=1, axis=1))

        tv_c = jnp.abs(x_up - xc) + jnp.abs(x_left - xc)

        # Carry this tile's last row for the next H tile of this batch.
        prev_ref[ci] = xc[th - 1:th, :]
        return acc + tv_c.astype(jnp.float32)   # accumulate channels in f32

    acc0 = jnp.zeros((th, w), jnp.float32)
    if c <= 8:
        # Fully unrolled: static channel indices, no loop overhead, and the
        # scheduler interleaves XLU rolls with VPU abs/add across channels.
        acc = acc0
        for ci in range(c):
            acc = channel_tv(ci, acc)
    else:
        acc = lax.fori_loop(0, c, channel_tv, acc0)
    o_ref[0] = acc.astype(o_ref.dtype)


_BLOCK_TARGET_BYTES = 2 * 1024 * 1024   # per input block (Pallas double-buffers)


def _choose_block_h(h, c, w, itemsize):
    """Largest multiple-of-8 divisor of H keeping one (C, TH, W) input block
    around ~2 MiB (safe for double-buffering + in-kernel temporaries under the
    default scoped-VMEM limit on v5e/v6e/v7x)."""
    target_rows = max(8, _BLOCK_TARGET_BYTES // (itemsize * max(1, c * w)))
    if h <= target_rows or h % 8 != 0:
        return h
    th = min(h, (target_rows // 8) * 8)
    while th > 8 and h % th != 0:
        th -= 8
    return th if h % th == 0 else h


def tv(x, block_h=None):
    """TV(size_average=False, reduce=True) forward: (B,C,H,W) -> (B,H,W) f32."""
    if not jnp.issubdtype(x.dtype, jnp.floating):
        x = x.astype(jnp.float32)
    b, c, h, w = x.shape

    th = _choose_block_h(h, c, w, x.dtype.itemsize)
    if block_h is not None and h % block_h == 0 and (block_h % 8 == 0 or block_h == h):
        th = block_h

    grid = (b, h // th)
    return pl.pallas_call(
        _tv_kernel,
        out_shape=jax.ShapeDtypeStruct((b, h, w), jnp.float32),
        grid_spec=pltpu.PrefetchScalarGridSpec(
            num_scalar_prefetch=0,
            grid=grid,
            in_specs=[pl.BlockSpec((1, c, th, w), lambda i, j: (i, 0, j, 0))],
            out_specs=pl.BlockSpec((1, th, w), lambda i, j: (i, j, 0)),
            scratch_shapes=[pltpu.VMEM((c, 1, w), x.dtype)],
        ),
        compiler_params=pltpu.CompilerParams(
            # Batch is independent (megacore-shardable); the H axis carries the
            # halo row across tiles, so it must stay sequential.
            dimension_semantics=("parallel", "arbitrary")),
    )(x)


def tv_loss(inp, target, size_average=True, reduce=True):
    """TVLoss.forward.  `target` is accepted but, matching the reference
    implementation exactly, the second TV map is also computed from `inp`
    (tv1(input)), so the loss is identically zero.  The TV kernel therefore
    runs only ONCE and the map is reused (single HBM pass over the input)."""
    # TODO(synk): if the reference bug is ever fixed (tv1(target)), fuse both
    # TV maps and the |.|/mean reduction into one kernel with a scalar output.
    intv = tv(inp)
    tartv = intv                      # reference computes tv1(input) as well
    out = jnp.abs(intv - tartv)       # keeps NaN/Inf propagation of the reference
    if reduce:
        return jnp.mean(out) if size_average else jnp.sum(out)
    return out


def _tv_ref(x):
    """Pure-JAX reference of the depthwise conv2d TV, for verification."""
    h = x.shape[2]
    w = x.shape[3]
    xp_v = jnp.pad(x, ((0, 0), (0, 0), (1, 1), (0, 0)))
    xp_h = jnp.pad(x, ((0, 0), (0, 0), (0, 0), (1, 1)))
    vdiff = xp_v[:, :, 0:h, :] - xp_v[:, :, 1:h + 1, :]
    hdiff = xp_h[:, :, :, 0:w] - xp_h[:, :, :, 1:w + 1]
    return jnp.sum(jnp.abs(vdiff) + jnp.abs(hdiff), axis=1)


if __name__ == "__main__":
    key = jax.random.PRNGKey(0)
    k1, k2, k3 = jax.random.split(key, 3)

    # Small case matching the module's typical use.
    x = jax.random.normal(k1, (2, 4, 16, 16), dtype=jnp.float32)
    t = jax.random.normal(k2, (2, 4, 16, 16), dtype=jnp.float32)

    tv_pallas = jax.block_until_ready(tv(x))
    assert tv_pallas.shape == (2, 16, 16)
    assert jnp.allclose(tv_pallas, _tv_ref(x), atol=1e-5, rtol=1e-5), (
        "TV kernel mismatch vs reference (single tile)")

    # Larger, lane-dense case that exercises H tiling + the carried halo row.
    x2 = jax.random.normal(k3, (2, 3, 32, 128), dtype=jnp.float32)
    tv2 = jax.block_until_ready(tv(x2, block_h=8))       # grid = (2, 4)
    assert jnp.allclose(tv2, _tv_ref(x2), atol=1e-5, rtol=1e-5), (
        "TV kernel mismatch vs reference (H-tiled with halo carry)")

    loss = jax.block_until_ready(tv_loss(x, t))
    assert loss.shape == ()                               # scalar (reduce+mean)
    assert jnp.allclose(loss, 0.0)                        # per reference semantics

    print("KERNEL_OK")
</pallas_src>

<mosaic_0001>
module attributes {stable_mosaic.version = 11 : i64} {
  func.func @_tv_kernel(%arg0: i32, %arg1: i32, %arg2: memref<1x4x16x16xf32, #tpu.memory_space<vmem>>, %arg3: memref<1x16x16xf32, #tpu.memory_space<vmem>>, %arg4: memref<4x1x16xf32, #tpu.memory_space<vmem>>) attributes {dimension_semantics = [#tpu.dimension_semantics<parallel>, #tpu.dimension_semantics<arbitrary>], iteration_bounds = array<i64: 2, 1>, scalar_prefetch = 0 : i64, scratch_operands = 1 : i64, tpu.core_type = #tpu.core_type<tc>, window_params = [{transform_indices = @transform_0, window_bounds = array<i64: 1, 4, 16, 16>}, {transform_indices = @transform_1, window_bounds = array<i64: 1, 16, 16>}]} {
    %c0_i32 = arith.constant 0 : i32
    %0 = arith.cmpi eq, %arg1, %c0_i32 : i32
    %1 = arith.extui %0 : i1 to i32
    %c0_i32_0 = arith.constant 0 : i32
    %2 = arith.cmpi ne, %1, %c0_i32_0 : i32
    scf.if %2 {
      %cst_53 = arith.constant 0.000000e+00 : f32
      %113 = vector.broadcast %cst_53 : f32 to vector<4x1x16xf32>
      %c0_54 = arith.constant 0 : index
      %c0_55 = arith.constant 0 : index
      %c0_56 = arith.constant 0 : index
      %114 = vector.load %arg4[%c0_54, %c0_55, %c0_56] : memref<4x1x16xf32, #tpu.memory_space<vmem>>, vector<4x1x16xf32>
      tpu.vector_store %arg4[%c0_54, %c0_55, %c0_56], %113 {strides = array<i32>} : memref<4x1x16xf32, #tpu.memory_space<vmem>>, vector<4x1x16xf32>,
    } else {
    }
    %3 = tpu.iota {dimensions = array<i32: 0>} : vector<16x1xi32>
    %c0_i32_1 = arith.constant 0 : i32
    %4 = vector.broadcast %c0_i32_1 : i32 to vector<16x1xi32>
    %5 = arith.cmpi eq, %3, %4 : vector<16x1xi32>
    %6 = tpu.iota {dimensions = array<i32: 1>} : vector<1x16xi32>
    %c0_i32_2 = arith.constant 0 : i32
    %7 = vector.broadcast %c0_i32_2 : i32 to vector<1x16xi32>
    %8 = arith.cmpi eq, %6, %7 : vector<1x16xi32>
    %cst = arith.constant 0.000000e+00 : f32
    %9 = vector.broadcast %cst : f32 to vector<16x16xf32>
    %c0 = arith.constant 0 : index
    %c0_3 = arith.constant 0 : index
    %c0_4 = arith.constant 0 : index
    %c0_5 = arith.constant 0 : index
    %10 = vector.load %arg2[%c0, %c0_3, %c0_4, %c0_5] : memref<1x4x16x16xf32, #tpu.memory_space<vmem>>, vector<1x1x16x16xf32>
    %11 = vector.shape_cast %10 : vector<1x1x16x16xf32> to vector<16x16xf32>
    %c0_6 = arith.constant 0 : index
    %c0_7 = arith.constant 0 : index
    %c0_8 = arith.constant 0 : index
    %12 = vector.load %arg4[%c0_6, %c0_7, %c0_8] : memref<4x1x16xf32, #tpu.memory_space<vmem>>, vector<1x1x16xf32>
    %13 = vector.shape_cast %12 : vector<1x1x16xf32> to vector<1x16xf32>
    %c1_i32 = arith.constant 1 : i32
    %14 = tpu.dynamic_rotate %11 by %c1_i32 dim 0 : vector<16x16xf32>, i32 -> vector<16x16xf32>
    %15 = vector.shape_cast %5 : vector<16x1xi1> to vector<16x1xi1>
    %16 = vector.broadcast %15 : vector<16x1xi1> to vector<16x16xi1>
    %17 = vector.shape_cast %13 : vector<1x16xf32> to vector<1x16xf32>
    %18 = vector.broadcast %17 : vector<1x16xf32> to vector<16x16xf32>
    %19 = arith.select %16, %18, %14 : vector<16x16xi1>, vector<16x16xf32>
    %c1_i32_9 = arith.constant 1 : i32
    %20 = tpu.dynamic_rotate %11 by %c1_i32_9 dim 1 : vector<16x16xf32>, i32 -> vector<16x16xf32>
    %cst_10 = arith.constant 0.000000e+00 : f32
    %21 = vector.shape_cast %8 : vector<1x16xi1> to vector<1x16xi1>
    %22 = vector.broadcast %21 : vector<1x16xi1> to vector<16x16xi1>
    %23 = vector.broadcast %cst_10 : f32 to vector<16x16xf32>
    %24 = arith.select %22, %23, %20 : vector<16x16xi1>, vector<16x16xf32>
    %25 = arith.subf %19, %11 : vector<16x16xf32>
    %26 = math.absf %25 : vector<16x16xf32>
    %27 = arith.subf %24, %11 : vector<16x16xf32>
    %28 = math.absf %27 : vector<16x16xf32>
    %29 = arith.addf %26, %28 : vector<16x16xf32>
    %30 = vector.extract_strided_slice %11 {offsets = [15, 0], sizes = [1, 16], strides = [1, 1]} : vector<16x16xf32> to vector<1x16xf32>
    %c0_11 = arith.constant 0 : index
    %c0_12 = arith.constant 0 : index
    %c0_13 = arith.constant 0 : index
    %31 = vector.load %arg4[%c0_11, %c0_12, %c0_13] : memref<4x1x16xf32, #tpu.memory_space<vmem>>, vector<1x1x16xf32>
    %32 = vector.shape_cast %31 : vector<1x1x16xf32> to vector<1x16xf32>
    %33 = vector.shape_cast %30 : vector<1x16xf32> to vector<1x1x16xf32>
    tpu.vector_store %arg4[%c0_11, %c0_12, %c0_13], %33 {strides = array<i32>} : memref<4x1x16xf32, #tpu.memory_space<vmem>>, vector<1x1x16xf32>,
    %34 = arith.addf %9, %29 : vector<16x16xf32>
    %c0_14 = arith.constant 0 : index
    %c1 = arith.constant 1 : index
    %c0_15 = arith.constant 0 : index
    %c0_16 = arith.constant 0 : index
    %35 = vector.load %arg2[%c0_14, %c1, %c0_15, %c0_16] : memref<1x4x16x16xf32, #tpu.memory_space<vmem>>, vector<1x1x16x16xf32>
    %36 = vector.shape_cast %35 : vector<1x1x16x16xf32> to vector<16x16xf32>
    %c1_17 = arith.constant 1 : index
    %c0_18 = arith.constant 0 : index
    %c0_19 = arith.constant 0 : index
    %37 = vector.load %arg4[%c1_17, %c0_18, %c0_19] : memref<4x1x16xf32, #tpu.memory_space<vmem>>, vector<1x1x16xf32>
    %38 = vector.shape_cast %37 : vector<1x1x16xf32> to vector<1x16xf32>
    %c1_i32_20 = arith.constant 1 : i32
    %39 = tpu.dynamic_rotate %36 by %c1_i32_20 dim 0 : vector<16x16xf32>, i32 -> vector<16x16xf32>
    %40 = vector.shape_cast %5 : vector<16x1xi1> to vector<16x1xi1>
    %41 = vector.broadcast %40 : vector<16x1xi1> to vector<16x16xi1>
    %42 = vector.shape_cast %38 : vector<1x16xf32> to vector<1x16xf32>
    %43 = vector.broadcast %42 : vector<1x16xf32> to vector<16x16xf32>
    %44 = arith.select %41, %43, %39 : vector<16x16xi1>, vector<16x16xf32>
    %c1_i32_21 = arith.constant 1 : i32
    %45 = tpu.dynamic_rotate %36 by %c1_i32_21 dim 1 : vector<16x16xf32>, i32 -> vector<16x16xf32>
    %cst_22 = arith.constant 0.000000e+00 : f32
    %46 = vector.shape_cast %8 : vector<1x16xi1> to vector<1x16xi1>
    %47 = vector.broadcast %46 : vector<1x16xi1> to vector<16x16xi1>
    %48 = vector.broadcast %cst_22 : f32 to vector<16x16xf32>
    %49 = arith.select %47, %48, %45 : vector<16x16xi1>, vector<16x16xf32>
    %50 = arith.subf %44, %36 : vector<16x16xf32>
    %51 = math.absf %50 : vector<16x16xf32>
    %52 = arith.subf %49, %36 : vector<16x16xf32>
    %53 = math.absf %52 : vector<16x16xf32>
    %54 = arith.addf %51, %53 : vector<16x16xf32>
    %55 = vector.extract_strided_slice %36 {offsets = [15, 0], sizes = [1, 16], strides = [1, 1]} : vector<16x16xf32> to vector<1x16xf32>
    %c1_23 = arith.constant 1 : index
    %c0_24 = arith.constant 0 : index
    %c0_25 = arith.constant 0 : index
    %56 = vector.load %arg4[%c1_23, %c0_24, %c0_25] : memref<4x1x16xf32, #tpu.memory_space<vmem>>, vector<1x1x16xf32>
    %57 = vector.shape_cast %56 : vector<1x1x16xf32> to vector<1x16xf32>
    %58 = vector.shape_cast %55 : vector<1x16xf32> to vector<1x1x16xf32>
    tpu.vector_store %arg4[%c1_23, %c0_24, %c0_25], %58 {strides = array<i32>} : memref<4x1x16xf32, #tpu.memory_space<vmem>>, vector<1x1x16xf32>,
    %59 = arith.addf %34, %54 : vector<16x16xf32>
    %c0_26 = arith.constant 0 : index
    %c2 = arith.constant 2 : index
    %c0_27 = arith.constant 0 : index
    %c0_28 = arith.constant 0 : index
    %60 = vector.load %arg2[%c0_26, %c2, %c0_27, %c0_28] : memref<1x4x16x16xf32, #tpu.memory_space<vmem>>, vector<1x1x16x16xf32>
    %61 = vector.shape_cast %60 : vector<1x1x16x16xf32> to vector<16x16xf32>
    %c2_29 = arith.constant 2 : index
    %c0_30 = arith.constant 0 : index
    %c0_31 = arith.constant 0 : index
    %62 = vector.load %arg4[%c2_29, %c0_30, %c0_31] : memref<4x1x16xf32, #tpu.memory_space<vmem>>, vector<1x1x16xf32>
    %63 = vector.shape_cast %62 : vector<1x1x16xf32> to vector<1x16xf32>
    %c1_i32_32 = arith.constant 1 : i32
    %64 = tpu.dynamic_rotate %61 by %c1_i32_32 dim 0 : vector<16x16xf32>, i32 -> vector<16x16xf32>
    %65 = vector.shape_cast %5 : vector<16x1xi1> to vector<16x1xi1>
    %66 = vector.broadcast %65 : vector<16x1xi1> to vector<16x16xi1>
    %67 = vector.shape_cast %63 : vector<1x16xf32> to vector<1x16xf32>
    %68 = vector.broadcast %67 : vector<1x16xf32> to vector<16x16xf32>
    %69 = arith.select %66, %68, %64 : vector<16x16xi1>, vector<16x16xf32>
    %c1_i32_33 = arith.constant 1 : i32
    %70 = tpu.dynamic_rotate %61 by %c1_i32_33 dim 1 : vector<16x16xf32>, i32 -> vector<16x16xf32>
    %cst_34 = arith.constant 0.000000e+00 : f32
    %71 = vector.shape_cast %8 : vector<1x16xi1> to vector<1x16xi1>
    %72 = vector.broadcast %71 : vector<1x16xi1> to vector<16x16xi1>
    %73 = vector.broadcast %cst_34 : f32 to vector<16x16xf32>
    %74 = arith.select %72, %73, %70 : vector<16x16xi1>, vector<16x16xf32>
    %75 = arith.subf %69, %61 : vector<16x16xf32>
    %76 = math.absf %75 : vector<16x16xf32>
    %77 = arith.subf %74, %61 : vector<16x16xf32>
    %78 = math.absf %77 : vector<16x16xf32>
    %79 = arith.addf %76, %78 : vector<16x16xf32>
    %80 = vector.extract_strided_slice %61 {offsets = [15, 0], sizes = [1, 16], strides = [1, 1]} : vector<16x16xf32> to vector<1x16xf32>
    %c2_35 = arith.constant 2 : index
    %c0_36 = arith.constant 0 : index
    %c0_37 = arith.constant 0 : index
    %81 = vector.load %arg4[%c2_35, %c0_36, %c0_37] : memref<4x1x16xf32, #tpu.memory_space<vmem>>, vector<1x1x16xf32>
    %82 = vector.shape_cast %81 : vector<1x1x16xf32> to vector<1x16xf32>
    %83 = vector.shape_cast %80 : vector<1x16xf32> to vector<1x1x16xf32>
    tpu.vector_store %arg4[%c2_35, %c0_36, %c0_37], %83 {strides = array<i32>} : memref<4x1x16xf32, #tpu.memory_space<vmem>>, vector<1x1x16xf32>,
    %84 = arith.addf %59, %79 : vector<16x16xf32>
    %c0_38 = arith.constant 0 : index
    %c3 = arith.constant 3 : index
    %c0_39 = arith.constant 0 : index
    %c0_40 = arith.constant 0 : index
    %85 = vector.load %arg2[%c0_38, %c3, %c0_39, %c0_40] : memref<1x4x16x16xf32, #tpu.memory_space<vmem>>, vector<1x1x16x16xf32>
    %86 = vector.shape_cast %85 : vector<1x1x16x16xf32> to vector<16x16xf32>
    %c3_41 = arith.constant 3 : index
    %c0_42 = arith.constant 0 : index
    %c0_43 = arith.constant 0 : index
    %87 = vector.load %arg4[%c3_41, %c0_42, %c0_43] : memref<4x1x16xf32, #tpu.memory_space<vmem>>, vector<1x1x16xf32>
    %88 = vector.shape_cast %87 : vector<1x1x16xf32> to vector<1x16xf32>
    %c1_i32_44 = arith.constant 1 : i32
    %89 = tpu.dynamic_rotate %86 by %c1_i32_44 dim 0 : vector<16x16xf32>, i32 -> vector<16x16xf32>
    %90 = vector.shape_cast %5 : vector<16x1xi1> to vector<16x1xi1>
    %91 = vector.broadcast %90 : vector<16x1xi1> to vector<16x16xi1>
    %92 = vector.shape_cast %88 : vector<1x16xf32> to vector<1x16xf32>
    %93 = vector.broadcast %92 : vector<1x16xf32> to vector<16x16xf32>
    %94 = arith.select %91, %93, %89 : vector<16x16xi1>, vector<16x16xf32>
    %c1_i32_45 = arith.constant 1 : i32
    %95 = tpu.dynamic_rotate %86 by %c1_i32_45 dim 1 : vector<16x16xf32>, i32 -> vector<16x16xf32>
    %cst_46 = arith.constant 0.000000e+00 : f32
    %96 = vector.shape_cast %8 : vector<1x16xi1> to vector<1x16xi1>
    %97 = vector.broadcast %96 : vector<1x16xi1> to vector<16x16xi1>
    %98 = vector.broadcast %cst_46 : f32 to vector<16x16xf32>
    %99 = arith.select %97, %98, %95 : vector<16x16xi1>, vector<16x16xf32>
    %100 = arith.subf %94, %86 : vector<16x16xf32>
    %101 = math.absf %100 : vector<16x16xf32>
    %102 = arith.subf %99, %86 : vector<16x16xf32>
    %103 = math.absf %102 : vector<16x16xf32>
    %104 = arith.addf %101, %103 : vector<16x16xf32>
    %105 = vector.extract_strided_slice %86 {offsets = [15, 0], sizes = [1, 16], strides = [1, 1]} : vector<16x16xf32> to vector<1x16xf32>
    %c3_47 = arith.constant 3 : index
    %c0_48 = arith.constant 0 : index
    %c0_49 = arith.constant 0 : index
    %106 = vector.load %arg4[%c3_47, %c0_48, %c0_49] : memref<4x1x16xf32, #tpu.memory_space<vmem>>, vector<1x1x16xf32>
    %107 = vector.shape_cast %106 : vector<1x1x16xf32> to vector<1x16xf32>
    %108 = vector.shape_cast %105 : vector<1x16xf32> to vector<1x1x16xf32>
    tpu.vector_store %arg4[%c3_47, %c0_48, %c0_49], %108 {strides = array<i32>} : memref<4x1x16xf32, #tpu.memory_space<vmem>>, vector<1x1x16xf32>,
    %109 = arith.addf %84, %104 : vector<16x16xf32>
    %c0_50 = arith.constant 0 : index
    %c0_51 = arith.constant 0 : index
    %c0_52 = arith.constant 0 : index
    %110 = vector.load %arg3[%c0_50, %c0_51, %c0_52] : memref<1x16x16xf32, #tpu.memory_space<vmem>>, vector<1x16x16xf32>
    %111 = vector.shape_cast %110 : vector<1x16x16xf32> to vector<16x16xf32>
    %112 = vector.shape_cast %109 : vector<16x16xf32> to vector<1x16x16xf32>
    tpu.vector_store %arg3[%c0_50, %c0_51, %c0_52], %112 {strides = array<i32>} : memref<1x16x16xf32, #tpu.memory_space<vmem>>, vector<1x16x16xf32>,
    return
  }
  func.func @transform_0(%arg0: i32, %arg1: i32) -> (i32, i32, i32, i32) {
    %c0_i32 = arith.constant 0 : i32
    %c0_i32_0 = arith.constant 0 : i32
    %c0_i32_1 = arith.constant 0 : i32
    return %arg0, %c0_i32, %arg1, %c0_i32_0 : i32, i32, i32, i32
  }
  func.func @transform_1(%arg0: i32, %arg1: i32) -> (i32, i32, i32) {
    %c0_i32 = arith.constant 0 : i32
    %c0_i32_0 = arith.constant 0 : i32
    return %arg0, %arg1, %c0_i32 : i32, i32, i32
  }
}

</mosaic_0001>

<bundles_post_ra>
// kernel: tpu_custom_call.1
= control target key start
LH: loop header
LB: loop body
LE: loop exit
PB: predicated region body
PF: predicated region fallthrough
CT: control target
= control target key end

     0   :  { %6 = vsyncpa [#allocation4], 0  ;;  %s960_s0 = inlined_call_operand.hbm [shape: f32[2,4,16,16], index: 0, kind: input, shape index: {}]   ;;  %s961_s1 = inlined_call_operand.hbm [shape: f32[2,16,16], index: 1, kind: output, shape index: {}]  }
   0x1   :  { %8 = vsyncpa [#allocation4 + $0x1], 0 }
   0x2   :  { %9 = vsyncpa [#allocation5], 0 }
   0x3   :  { %11 = vsyncpa [#allocation5 + $0x1], 0  ;;  %s712_s6 = smov 0   ;;  %s714_s7 = smov 0  }
   0x4   :  { %s716_s8 = smov 0   ;;  %s718_s9 = smov 0  }
   0x5   :  { %s720_s10 = smov 0   ;;  %s722_s11 = smov 0  }
   0x6 LB: > { %s485_s12 = sadd.s32 4294967295, %s693_s11   ;;  %s486_s13 = sadd.s32 4294967294, %s693_s11   ;;  %s693_s11 = sphi %s722_s11, %s17_s11   ;;  %s689_s10 = sphi %s720_s10, %s970_s10   ;;  %s685_s9 = sphi %s718_s9, %s969_s9   ;;  %s681_s8 = sphi %s716_s8, %s968_s8   ;;  %s677_s7 = sphi %s714_s7, %s967_s7   ;;  %s673_s6 = sphi %s712_s6, %s966_s6  }
   0x7   : > { %s29_s14 = sadd.s32 1, %s689_s10  ;;  %s38_s15 = sadd.s32 1, %s681_s8 }
   0x8   : > { %p31_p0 = scmp.ge.s32.totalorder %s29_s14, 2  ;;  %p45_p1 = scmp.ne.s32.totalorder %s681_s8, %s677_s7 }
   0x9   : > { %p46_p2 = scmp.eq.s32.totalorder %s693_s11, 0  ;;  %p51_p3 = scmp.ne.s32.totalorder %s677_s7, %s673_s6 }
   0xa   : > { %s972_s14 = smov (%p31_p0, %s29_s14), 0  ;;  %p52_p5 = scmp.eq.s32.totalorder %s485_s12, 0 }
   0xb   : > { %p753_p4 = por %p46_p2, %p45_p1  ;;  %s33_s17 = ssub.s32 %s689_s10, %s972_s14 }
   0xc   : > { %p77_p6 = scmp.eq.s32.totalorder %s485_s12, 1  ;;  %p36_p7 = scmp.eq.s32.totalorder %s33_s17, 0 }
   0xd   : > { %p759_p8 = por %p52_p5, %p51_p3  ;;  %p83_p10 = scmp.eq.s32.totalorder %s486_s13, 1 }
   0xe   : > { %p763_p9 = por %p77_p6, %p45_p1  ;;  %p488_p12 = scmp.ge.s32.totalorder %s693_s11, 2 }
   0xf   : > { %s768_s20 = scalar_select %p36_p7, %s681_s8, %s38_s15  }
  0x10   : > { %p770_p11 = por %p83_p10, %p51_p3  ;;  %p520_p13 = scmp.lt.s32.totalorder %s693_s11, 2 }
  0x11   : > { %s103_s22 = sand.u32 1, %s681_s8   ;;  %s506_s24 = sshll.u32 %s689_s10, 6 }
  0x12   : > { %s489_s23 = sshll.u32 %s103_s22, 6  ;;  %s114_s27 = scalar_lea.hbm %s960_s0, %s506_s24 }
  0x13   : > { %s107_s28 = scalar_lea.vmem [#allocation3], %s489_s23  ;;  %s115_s30 = sshll.u32 %s114_s27, 4  ;;  %s116_s30 = int_to_ptr.hbm [resolvable:$true] %s115_s30 }
  0x14   : > { %s117_s29 = sshll.u32 %s107_s28, 4  ;;  %p513_p0 = pnand %p520_p13, %p753_p4  ;;  %s118_s29 = int_to_ptr.vmem [resolvable:$true] %s117_s29 }
  0x15   : > { %p492_p1 = scmp.ge.s32.totalorder %s693_s11, 1  ;;  %s104_s2 = scalar_lea.sflag [#allocation4], %s103_s22 }
  0x16   : > { %s695_s3 = smov 128   ;;  %s696_s4 = smov 8  }
  0x17   : > { %515 = dma.hbm_to_vmem [thread:$0]  (!%p513_p0), %s116_s30, 1024, %s118_s29, %s104_s2, %s695_s3, %s695_s3, %s696_s4  }
  0x18   : > { %p125_p2 = scmp.lt.s32.totalorder %s693_s11, 3 }
  0x1a   : > { %p126_p3 = pnand %p492_p1, %p125_p2 }
  0x1b   : > { %s786_s5 = sand.u32 (!%p126_p3), 1, %s677_s7  }
  0x1c   : > { %129 = sbr.rel (%p126_p3) target bundleno = 405 (0x195), region = 24  ;;  %s493_s12 = sshll.u32 (!%p126_p3), %s786_s5, 6 }
  0x1d   : > { %s132_s13 = scalar_lea.sflag (!%p126_p3), [#allocation4], %s786_s5  ;;  %s135_s15 = scalar_lea.vmem (!%p126_p3), [#allocation3], %s493_s12 }
  0x21   : > { %664 = dma.done.wait (%p759_p8), %s132_s13, 1024  }
  0x22   : > { %666 = vsyncadd (%p759_p8), %s132_s13, 4294966272  ;;  %v794_v0 = vld [vmem:[%s135_s15 + $0x10] sm:$0xff]  ;;  %v796_v1 = vld [vmem:[%s135_s15] sm:$0xff]  ;;  %s697_s16 = smov 16   ;;  %vm191_vm0 = vcmask 1047680   ;;  %s698_s17 = smov 113   ;;  %v166_v46 = vlaneseq }
  0x23   : > { %244 = vrot.lane.b32.xlu1 %v794_v0, %s697_s16  ;;  %192 = vrot.lane.b32.xlu0 %v796_v1, %s697_s16  ;;  %v802_v2 = vld [vmem:[%s135_s15 + $0x20] sm:$0xff]  ;;  %v806_v3 = vld [vmem:[%s135_s15 + $0x8] sm:$0xff]  ;;  %vm161_vm1 = vcmask 122880   ;;  %v699_v40 = vmov 0.0   ;;  %vm226_vm2 = vcmask 130055   ;;  %v177_v50 = vrot.slane %v796_v1, 7 }
  0x24   : > { %293 = vrot.lane.b32.xlu2 %v802_v2, %s697_s16  ;;  %v808_v4 = vld [vmem:[%s135_s15 + $0x18] sm:$0xff]  ;;  %v810_v5 = vld [vmem:[%s135_s15 + $0x28] sm:$0xff]  ;;  %v818_v6 = vld [vmem:[%s135_s15 + $0x30] sm:$0xff]  ;;  %162 = vst.msk [vmem:[#allocation2] sm:$0x1] %vm161_vm1, %v699_v40  ;;  %v167_v47 = vshrl.u32 %v166_v46, 7 }
  0x25   : > { %v820_v7 = vld [vmem:[%s135_s15 + $0x38] sm:$0xff]  ;;  %163 = vst.msk [vmem:[#allocation2 + $0x1] sm:$0x1] %vm161_vm1, %v699_v40  ;;  %v178_v49 = vrot.slane %v806_v3, 7  ;;  %v872_v52 = vand.u32 127, %v166_v46  ;;  %v284_v53 = vrot.slane %v802_v2, 7 }
  0x26   : > { %164 = vst.msk [vmem:[#allocation2 + $0x2] sm:$0x1] %vm161_vm1, %v699_v40  ;;  %vm179_vm3 = vcmp.lt.s32.totalorder %v167_v47, 1  ;;  %v285_v54 = vrot.slane %v810_v5, 7  ;;  %v235_v55 = vrot.slane %v794_v0, 7  ;;  %v236_v56 = vrot.slane %v808_v4, 7 }
  0x27   : > { %165 = vst.msk [vmem:[#allocation2 + $0x3] sm:$0x1] %vm161_vm1, %v699_v40  ;;  %v333_v57 = vrot.slane %v818_v6, 7  ;;  %v334_v58 = vrot.slane %v820_v7, 7  ;;  %vm169_vm4 = vcmp.eq.s32.totalorder %v167_v47, 0  ;;  %v181_v59 = vsel %vm179_vm3, %v178_v49, %v177_v50  ;;  %s494_s18 = sshll.u32 %s786_s5, 4 }
  0x28   : > { %v238_v60 = vsel %vm179_vm3, %v236_v56, %v235_v55  ;;  %vm173_vm5 = vcmp.eq.s32.totalorder %v872_v52, 0  ;;  %v180_v61 = vsel %vm179_vm3, %v177_v50, %v178_v49  ;;  %s507_s22 = sshll.u32 %s685_s9, 4  ;;  %vm377_vm6 = vcmask 130048   ;;  %s154_s9 = scalar_lea.vmem [#allocation6], %s494_s18 }
  0x29   : > { %s394_s25 = scalar_lea.hbm %s961_s1, %s507_s22  ;;  %s395_s26 = sshll.u32 %s154_s9, 4  ;;  %s396_s26 = int_to_ptr.vmem [resolvable:$true] %s395_s26 }
  0x2a   : > { %s397_s27 = sshll.u32 %s394_s25, 4  ;;  %s381_s28 = scalar_lea.sflag [#allocation5], %s786_s5  ;;  %s398_s27 = int_to_ptr.hbm [resolvable:$true] %s397_s27 }
  0x2b   : > { %195 = vrot.lane.b32.xlu0 %v806_v3, %s697_s16  ;;  %247 = vrot.lane.b32.xlu1 %v808_v4, %s697_s16  ;;  %v577_v41 = vld [vmem:[#allocation2] ss:$0 sm:$0xff]  ;;  %s625_s29 = sshra.s32 %s398_s27, 4  ;;  %s631_s4 = scalar_lea.hbm %s961_s1, 32  ;;  %s626_s29 = int_to_ptr.hbm [resolvable:$true] %s625_s29 }
  0x2c   : > { %296 = vrot.lane.b32.xlu2 %v810_v5, %s697_s16  ;;  %227 = vst.msk [vmem:[#allocation2 - $0x7] sm:$0x80] %vm226_vm2, %v806_v3  ;;  %v579_v43 = vld [vmem:[#allocation2 + $0x1] ss:$0 sm:$0xff]  ;;  %v189_v63 = vsel %vm169_vm4, %v577_v41, %v181_v59  ;;  %s627_s30 = scalar_lea.hbm %s626_s29, 16  ;;  %p632_p7 = scmp.lt.s32.totalorder %s626_s29, %s961_s1 }
  0x2d   : > { %v578_v42 = vld [vmem:[#allocation2 + $0x2] ss:$0 sm:$0xff]  ;;  %276 = vst.msk [vmem:[#allocation2 - $0x6] sm:$0x80] %vm226_vm2, %v808_v4  ;;  %p628_p4 = scmp.ne.s32.totalorder %s626_s29, %s627_s30  ;;  %p633_p8 = scmp.lt.s32.totalorder %s631_s4, %s627_s30 }
  0x2e   : > { %325 = vst.msk [vmem:[#allocation2 - $0x5] sm:$0x80] %vm226_vm2, %v810_v5  ;;  %v580_v44 = vld [vmem:[#allocation2 + $0x3] ss:$0 sm:$0xff] }
  0x2f   : > { %374 = vst.msk [vmem:[#allocation2 - $0x4] sm:$0x80] %vm226_vm2, %v820_v7  ;;  %p629_p5 = pnand %p628_p4, %p763_p9  ;;  %p634_p10 = por %p633_p8, %p632_p7 }
  0x31   : > { %p630_p6 = pneg %p629_p5 }
  0x33   : > { %342 = vrot.lane.b32.xlu0 %v818_v6, %s697_s16  ;;  %345 = vrot.lane.b32.xlu1 %v820_v7, %s697_s16  ;;  %p635_p13 = pnand %p634_p10, %p630_p6 }
  0x7e   : > { %v294_v8 = vpop.permute.xlu2 %293 }
  0x7f   : > { %v295_v20 = vsel %vm191_vm0, %v294_v8, %v802_v2  ;;  %v287_v8 = vsel %vm179_vm3, %v285_v54, %v284_v53 }
  0x86   : > { %v297_v13 = vpop.permute.xlu2 %296 }
  0x87   : > { %v298_v14 = vsel %vm191_vm0, %v297_v13, %v810_v5 }
  0x95   : > { %v245_v9 = vpop.permute.xlu1 %244  ;;  %v193_v10 = vpop.permute.xlu0 %192 }
  0x96   : > { %v246_v11 = vsel %vm191_vm0, %v245_v9, %v794_v0  ;;  %v194_v12 = vsel %vm191_vm0, %v193_v10, %v796_v1  ;;  %v336_v9 = vsel %vm179_vm3, %v334_v58, %v333_v57  ;;  %v242_v10 = vsel %vm169_vm4, %v579_v43, %v238_v60 }
  0x97   : > { %250 = vrot.lane.b32.xlu1 %v246_v11, %s697_s16  ;;  %198 = vrot.lane.b32.xlu2 %v194_v12, %s697_s16  ;;  %v217_v12 = vsub.f32 %v180_v61, %v806_v3 }
  0x9d   : > { %v196_v15 = vpop.permute.xlu0 %195  ;;  %v248_v16 = vpop.permute.xlu1 %247 }
  0x9e   : > { %v197_v17 = vsel %vm191_vm0, %v196_v15, %v806_v3  ;;  %v249_v18 = vsel %vm191_vm0, %v248_v16, %v808_v4  ;;  %v291_v15 = vsel %vm169_vm4, %v578_v42, %v287_v8  ;;  %v340_v16 = vsel %vm169_vm4, %v580_v44, %v336_v9 }
  0x9f   : > { %301 = vrot.lane.b32.xlu1 %v298_v14, %s697_s16  ;;  %200 = vrot.lane.b32.xlu0 %v197_v17, %s697_s16  ;;  %v216_v14 = vsub.f32 %v189_v63, %v796_v1 }
  0xa0   : > { %252 = vrot.lane.b32.xlu2 %v249_v18, %s697_s16  ;;  %v237_v18 = vsel %vm179_vm3, %v235_v55, %v236_v56 }
  0xa5   : > { %v343_v19 = vpop.permute.xlu0 %342  ;;  %v346_v22 = vpop.permute.xlu1 %345 }
  0xa6   : > { %v344_v21 = vsel %vm191_vm0, %v343_v19, %v818_v6  ;;  %v347_v23 = vsel %vm191_vm0, %v346_v22, %v820_v7  ;;  %v266_v19 = vsub.f32 %v242_v10, %v794_v0 }
  0xa7   : > { %299 = vrot.lane.b32.xlu0 %v295_v20, %s697_s16 }
  0xa8   : > { %348 = vrot.lane.b32.xlu2 %v344_v21, %s697_s16 }
  0xaf   : > { %350 = vrot.lane.b32.xlu0 %v347_v23, %s697_s16  ;;  %v219_v23 = vand.u32 2147483647, %v217_v12 }
  0xf1   : > { %v199_v24 = vpop.permute.xlu2 %198 }
  0xf2   : > { %v202_v25 = vsel %vm191_vm0, %v199_v24, %v796_v1  ;;  %v315_v24 = vsub.f32 %v291_v15, %v802_v2 }
  0xf3   : > { %208 = vrot.lane.b32.xlu1 %v202_v25, %s698_s17 }
  0xfa   : > { %v253_v26 = vpop.permute.xlu2 %252 }
  0xfb   : > { %v255_v27 = vsel %vm191_vm0, %v253_v26, %v808_v4  ;;  %v364_v26 = vsub.f32 %v340_v16, %v818_v6 }
  0xfc   : > { %260 = vrot.lane.b32.xlu1 %v255_v27, %s698_s17  ;;  %v218_v27 = vand.u32 2147483647, %v216_v14 }
  0xfd   : > { %v366_v40 = vand.u32 2147483647, %v364_v26 }
 0x102   : > { %v349_v28 = vpop.permute.xlu2 %348 }
 0x103   : > { %v352_v29 = vsel %vm191_vm0, %v349_v28, %v818_v6 }
 0x104   : > { %356 = vrot.lane.b32.xlu1 %v352_v29, %s698_s17  ;;  %v267_v29 = vsub.f32 %v237_v18, %v808_v4 }
 0x106   : > { %v269_v44 = vand.u32 2147483647, %v267_v29 }
 0x109   : > { %v251_v30 = vpop.permute.xlu1 %250 }
 0x10a   : > { %v254_v31 = vsel %vm191_vm0, %v251_v30, %v794_v0 }
 0x10b   : > { %258 = vrot.lane.b32.xlu0 %v254_v31, %s698_s17 }
 0x111   : > { %v302_v32 = vpop.permute.xlu1 %301  ;;  %v201_v33 = vpop.permute.xlu0 %200 }
 0x112   : > { %v304_v34 = vsel %vm191_vm0, %v302_v32, %v810_v5  ;;  %v203_v35 = vsel %vm191_vm0, %v201_v33, %v806_v3 }
 0x113   : > { %309 = vrot.lane.b32.xlu0 %v304_v34, %s698_s17  ;;  %210 = vrot.lane.b32.xlu2 %v203_v35, %s698_s17  ;;  %v268_v34 = vand.u32 2147483647, %v266_v19  ;;  %v286_v35 = vsel %vm179_vm3, %v284_v53, %v285_v54 }
 0x119   : > { %v300_v36 = vpop.permute.xlu0 %299 }
 0x11a   : > { %v303_v37 = vsel %vm191_vm0, %v300_v36, %v802_v2 }
 0x11b   : > { %307 = vrot.lane.b32.xlu2 %v303_v37, %s698_s17 }
 0x121   : > { %v351_v38 = vpop.permute.xlu0 %350 }
 0x122   : > { %v353_v39 = vsel %vm191_vm0, %v351_v38, %v820_v7 }
 0x123   : > { %358 = vrot.lane.b32.xlu2 %v353_v39, %s698_s17  ;;  %v317_v39 = vand.u32 2147483647, %v315_v24 }
 0x165   : > { %v209_v45 = vpop.permute.xlu1 %208 }
 0x166   : > { %v214_v13 = vsel %vm173_vm5, 0.0, %v209_v45  ;;  %v316_v45 = vsub.f32 %v286_v35, %v810_v5 }
 0x167   : > { %v220_v22 = vsub.f32 %v214_v13, %v796_v1 }
 0x168   : > { %v318_v55 = vand.u32 2147483647, %v316_v45 }
 0x169   : > { %v222_v36 = vand.u32 2147483647, %v220_v22 }
 0x16b   : > { %v224_v46 = vadd.f32 %v222_v36, %v218_v27 }
 0x16d   : > { %v211_v48 = vpop.permute.xlu2 %210 }
 0x16e   : > { %v261_v51 = vpop.permute.xlu1 %260  ;;  %v215_v21 = vsel %vm173_vm5, 0.0, %v211_v48 }
 0x16f   : > { %v265_v25 = vsel %vm173_vm5, 0.0, %v261_v51  ;;  %v221_v33 = vsub.f32 %v215_v21, %v806_v3 }
 0x170   : > { %v271_v37 = vsub.f32 %v265_v25, %v808_v4 }
 0x171   : > { %v223_v43 = vand.u32 2147483647, %v221_v33 }
 0x173   : > { %v225_v54 = vadd.f32 %v223_v43, %v219_v23 }
 0x175   : > { %v308_v62 = vpop.permute.xlu2 %307 }
 0x176   : > { %v357_v11 = vpop.permute.xlu1 %356  ;;  %v313_v17 = vsel %vm173_vm5, 0.0, %v308_v62 }
 0x177   : > { %v362_v20 = vsel %vm173_vm5, 0.0, %v357_v11  ;;  %v319_v28 = vsub.f32 %v313_v17, %v802_v2  ;;  %v335_v2 = vsel %vm179_vm3, %v333_v57, %v334_v58 }
 0x178   : > { %v368_v31 = vsub.f32 %v362_v20, %v818_v6  ;;  %v365_v4 = vsub.f32 %v335_v2, %v820_v7 }
 0x179   : > { %v321_v3 = vand.u32 2147483647, %v319_v28 }
 0x17a   : > { %v370_v42 = vand.u32 2147483647, %v368_v31  ;;  %v367_v57 = vand.u32 2147483647, %v365_v4 }
 0x17b   : > { %v323_v49 = vadd.f32 %v321_v3, %v317_v39 }
 0x17c   : > { %v372_v51 = vadd.f32 %v370_v42, %v366_v40 }
 0x17d   : > { %v259_v30 = vpop.permute.xlu0 %258  ;;  %v359_v32 = vpop.permute.xlu2 %358 }
 0x17e   : > { %v264_v1 = vsel %vm173_vm5, 0.0, %v259_v30  ;;  %v363_v6 = vsel %vm173_vm5, 0.0, %v359_v32 }
 0x17f   : > { %v270_v38 = vsub.f32 %v264_v1, %v794_v0  ;;  %v273_v0 = vand.u32 2147483647, %v271_v37  ;;  %v369_v48 = vsub.f32 %v363_v6, %v820_v7 }
 0x181   : > { %v272_v41 = vand.u32 2147483647, %v270_v38  ;;  %v275_v58 = vadd.f32 %v273_v0, %v269_v44  ;;  %v371_v61 = vand.u32 2147483647, %v369_v48 }
 0x183   : > { %v274_v47 = vadd.f32 %v272_v41, %v268_v34  ;;  %v278_v63 = vadd.f32 %v275_v58, %v225_v54  ;;  %v373_v8 = vadd.f32 %v371_v61, %v367_v57 }
 0x185   : > { %v277_v50 = vadd.f32 %v274_v47, %v224_v46  ;;  %v310_v53 = vpop.permute.xlu0 %309 }
 0x186   : > { %v314_v56 = vsel %vm173_vm5, 0.0, %v310_v53 }
 0x187   : > { %v326_v59 = vadd.f32 %v323_v49, %v277_v50  ;;  %v320_v60 = vsub.f32 %v314_v56, %v810_v5 }
 0x189   : > { %v375_v7 = vadd.f32 %v372_v51, %v326_v59  ;;  %v322_v62 = vand.u32 2147483647, %v320_v60 }
 0x18b   : > { %378 = vst.msk [vmem:[%s154_s9] sm:$0xff] %vm377_vm6, %v375_v7  ;;  %v324_v52 = vadd.f32 %v322_v62, %v318_v55 }
 0x18d   : > { %v327_v9 = vadd.f32 %v324_v52, %v278_v63 }
 0x18f   : > { %v376_v5 = vadd.f32 %v373_v8, %v327_v9 }
 0x191   : > { %379 = vst.msk [vmem:[%s154_s9 + $0x8] sm:$0xff] %vm377_vm6, %v376_v5 }
 0x192   : > { %638 = shalt.err (!%p635_p13)
}
 0x193   : > { %s700_s5 = smov 128   ;;  %s701_s15 = smov 8  }
 0x194   : > { %510 = dma.vmem_to_hbm [thread:$0]  (%p763_p9), %s396_s26, 256, %s398_s27, %s381_s28, %s700_s5, %s700_s5, %s701_s15  }
 0x195 PF: > { %s412_s16 = sand.u32 1, %s673_s6   ;;  %p517_p0 = pnand %p488_p12, %p770_p11 }
 0x196   : > { %s413_s17 = scalar_lea.sflag [#allocation5], %s412_s16 }
 0x197   : > { %p518_p1 = pneg %p517_p0 }
 0x199   : > { %668 = dma.done.wait (%p518_p1), %s413_s17, 256  }
 0x19a   : > { %670 = vsyncadd (%p518_p1), %s413_s17, 4294967040  ;;  %s17_s11 = sadd.s32 1, %s693_s11   ;;  %s966_s6 = smov %s677_s7 }
 0x19b   : > { %p14_p2 = scmp.ge.s32.totalorder %s17_s11, 4   ;;  %s967_s7 = smov %s681_s8 }
 0x19c   : > { %s968_s8 = smov %s768_s20  ;;  %s969_s9 = smov %s689_s10 }
 0x19d   : > { %s970_s10 = smov %s972_s14  ;;  %16 = sbr.rel (!%p14_p2) target bundleno = 6 (0x6), region = 79 }
 0x1a2   :  { %419 = vsyncpa [#allocation4], 1 }
 0x1a3   :  { %421 = vsyncpa [#allocation4 + $0x1], 1 }
 0x1a4   :  { %422 = vsyncpa [#allocation5], 1 }
 0x1a5   :  { %424 = vsyncpa [#allocation5 + $0x1], 1 }

</bundles_post_ra>
